<compile_context>
chip_gen: v6e
topology: v6e:2x2x1
jax: 0.10.0
libtpu: 0.0.40
codegen_flags: <defaults>
</compile_context>

<pallas_src>
import functools

import jax
import jax.numpy as jnp
from jax.experimental import pallas as pl
from jax.experimental.pallas import tpu as pltpu


def _model_kernel(x_ref, o_ref, *, loop_count, use_tanh):
    """activation + closed-form accumulation + fused channel duplication (the cat)."""
    xv = x_ref[...]                                   # (tb, C*D) float32
    if use_tanh:
        z = jnp.tanh(xv)                              # EUP slot (free filler here)
    else:
        z = jnp.maximum(xv, 0.0)                      # relu (statically dead branch)
    # `for _ in range(a): y = y + act(y)`  ==>  y + a * act(y)
    # (bit-exact vs. the serial loop when a is a power of two; a = B = 2 here)
    res = xv + jnp.asarray(loop_count, xv.dtype) * z
    # torch.cat((x, x), dim=1) flattened row-major == [res | res] along lanes.
    # Single lane-dense store of the whole (tb, 2*CD) block.
    o_ref[...] = jnp.concatenate([res, res], axis=-1)


def _pick_row_tile(B, CD, itemsize, max_tile_bytes=4 << 20):
    """Largest multiple-of-8 divisor of B whose (in+out) tile fits the byte cap.

    Falls back to the full batch (legal full-extent block) when B cannot be
    tiled on the sublane axis (B < 8 or B % 8 != 0), e.g. the shipped B = 2.
    """
    if B % 8 != 0:
        return B
    best = None
    for tb in range(8, B + 1, 8):
        if B % tb == 0 and 3 * tb * CD * itemsize <= max_tile_bytes:
            best = tb
    return best if best is not None else 8


def model_forward(x):
    B, C, D = x.shape
    CD = C * D
    y_shape = (B, 2 * C, D)                      # shape of torch's y = cat((x, x), 1)

    # Static Python branch, exactly as in the torch module: y.shape (a 3-tuple
    # post-concat) is compared against (2, 12) -> always unequal -> tanh.
    use_tanh = tuple(y_shape) != (2, 12)

    # TODO(synk): the reference does `a, b, c = x.shape` on a 2-D tensor and then
    # `y + x` with broadcast-incompatible shapes, which raises at runtime in
    # PyTorch.  The only well-defined reading is a = leading dim (= B) and the
    # activation added back in y's layout; that is what is implemented here.
    loop_count = int(y_shape[0])

    x2d = x.reshape(B, CD)                       # free contiguous reshape
    itemsize = jnp.dtype(x.dtype).itemsize
    tb = _pick_row_tile(B, CD, itemsize)
    grid = (B // tb,)

    kernel = functools.partial(
        _model_kernel, loop_count=loop_count, use_tanh=use_tanh)

    out = pl.pallas_call(
        kernel,
        out_shape=jax.ShapeDtypeStruct((B, 2 * CD), x.dtype),
        grid=grid,
        in_specs=[pl.BlockSpec((tb, CD), lambda i: (i, 0))],
        out_specs=pl.BlockSpec((tb, 2 * CD), lambda i: (i, 0)),
        compiler_params=pltpu.CompilerParams(
            dimension_semantics=("parallel",)),
        cost_estimate=pl.CostEstimate(
            flops=2 * B * CD,
            transcendentals=B * CD,
            bytes_accessed=3 * B * CD * itemsize),
    )(x2d)

    # (B, 2*C*D) -> (B, 2C, D): matches cat((x, x), dim=1) layout exactly
    # (free reshape of a contiguous array).
    return out.reshape(y_shape)


if __name__ == "__main__":
    key = jax.random.PRNGKey(0)
    x = jax.random.normal(key, (2, 3, 4), dtype=jnp.float32)

    out = jax.block_until_ready(model_forward(x))

    # Pure-JAX reference for the same (repaired) semantics.
    y_ref = jnp.concatenate([x, x], axis=1)
    z_ref = jnp.tanh(y_ref.reshape(y_ref.shape[0], -1)).reshape(y_ref.shape)
    ref = y_ref + y_ref.shape[0] * z_ref

    assert out.shape == (2, 6, 4), out.shape
    assert out.dtype == jnp.float32, out.dtype
    assert jnp.allclose(out, ref, atol=1e-6), "kernel output mismatch vs reference"
    print("KERNEL_OK")
</pallas_src>

<mosaic_0001>
module attributes {stable_mosaic.version = 11 : i64} {
  func.func @_model_kernel(%arg0: i32, %arg1: memref<2x12xf32, #tpu.memory_space<vmem>>, %arg2: memref<2x24xf32, #tpu.memory_space<vmem>>) attributes {dimension_semantics = [#tpu.dimension_semantics<parallel>], iteration_bounds = array<i64: 1>, scalar_prefetch = 0 : i64, scratch_operands = 0 : i64, tpu.core_type = #tpu.core_type<tc>, window_params = [{transform_indices = @transform_0, window_bounds = array<i64: 2, 12>}, {transform_indices = @transform_1, window_bounds = array<i64: 2, 24>}]} {
    %c0 = arith.constant 0 : index
    %c0_0 = arith.constant 0 : index
    %0 = vector.load %arg1[%c0, %c0_0] : memref<2x12xf32, #tpu.memory_space<vmem>>, vector<2x12xf32>
    %1 = math.tanh %0 : vector<2x12xf32>
    %cst = arith.constant 2.000000e+00 : f32
    %2 = vector.broadcast %cst : f32 to vector<2x12xf32>
    %3 = arith.mulf %2, %1 : vector<2x12xf32>
    %4 = arith.addf %0, %3 : vector<2x12xf32>
    %5 = tpu.concatenate %4, %4 in 1 : vector<2x12xf32>, vector<2x12xf32> -> vector<2x24xf32>
    %c0_1 = arith.constant 0 : index
    %c0_2 = arith.constant 0 : index
    %6 = vector.load %arg2[%c0_1, %c0_2] : memref<2x24xf32, #tpu.memory_space<vmem>>, vector<2x24xf32>
    tpu.vector_store %arg2[%c0_1, %c0_2], %5 {strides = array<i32>} : memref<2x24xf32, #tpu.memory_space<vmem>>, vector<2x24xf32>,
    return
  }
  func.func @transform_0(%arg0: i32) -> (i32, i32) {
    %c0_i32 = arith.constant 0 : i32
    %c0_i32_0 = arith.constant 0 : i32
    return %arg0, %c0_i32 : i32, i32
  }
  func.func @transform_1(%arg0: i32) -> (i32, i32) {
    %c0_i32 = arith.constant 0 : i32
    %c0_i32_0 = arith.constant 0 : i32
    return %arg0, %c0_i32 : i32, i32
  }
}

</mosaic_0001>

<bundles_post_ra>
// kernel: tpu_custom_call.1
= control target key start
LH: loop header
LB: loop body
LE: loop exit
PB: predicated region body
PF: predicated region fallthrough
CT: control target
= control target key end

     0   :  { %6 = vsyncpa [#allocation3], 0  ;;  %s116_s0 = inlined_call_operand.hbm [shape: f32[2,12], index: 0, kind: input, shape index: {}]   ;;  %s117_s1 = inlined_call_operand.hbm [shape: f32[2,24], index: 1, kind: output, shape index: {}]  }
   0x1   :  { %7 = vsyncpa [#allocation4], 0  ;;  %s97_s6 = smov [#allocation2]  }
   0x2   :  { %s14_s7 = sshll.u32 %s97_s6, 4  ;;  %s15_s7 = int_to_ptr.vmem [resolvable:$true] %s14_s7 }
   0x3   :  { %s61_s8 = scalar_lea.vmem %s15_s7, 32  ;;  %p66_p1 = scmp.lt.s32.totalorder %s15_s7, %s15_s7 }
   0x4   :  { %p62_p0 = scmp.ne.s32.totalorder %s15_s7, %s61_s8  ;;  %p67_p2 = scmp.lt.s32.totalorder %s61_s8, %s61_s8 }
   0x6   :  { %p68_p3 = por %p67_p2, %p66_p1 }
   0x8   :  { %p69_p4 = pnand %p68_p3, %p62_p0 }
   0xa   :  { %72 = shalt.err (!%p69_p4)
}
   0xb   :  { %17 = dma.hbm_to_vmem [thread:$0]  %s116_s0, 32, %s15_s7, [#allocation3]  }
   0xc   :  { %93 = dma.done.wait [#allocation3], 32  }
   0xd   :  { %94 = vsyncadd [#allocation3], 4294967264  ;;  %v21_v0 = vld [vmem:[#allocation2] sm:$0x3]  ;;  %s98_s11 = smov 12   ;;  %s99_s12 = smov [#allocation5]  }
   0xe   :  { %51 = vtanh.f32 %v21_v0  ;;  %s39_s13 = sshll.u32 %s99_s12, 4  ;;  %vm29_vm0 = vcmask 97280   ;;  %vm31_vm1 = vcmask 189440   ;;  %s40_s13 = int_to_ptr.vmem [resolvable:$true] %s39_s13 }
   0xf   :  { %s73_s14 = scalar_lea.vmem %s40_s13, 32  ;;  %p78_p6 = scmp.lt.s32.totalorder %s40_s13, %s40_s13 }
  0x10   :  { %p74_p5 = scmp.ne.s32.totalorder %s40_s13, %s73_s14  ;;  %p79_p7 = scmp.lt.s32.totalorder %s73_s14, %s73_s14 }
  0x12   :  { %p80_p8 = por %p79_p7, %p78_p6 }
  0x14   :  { %p81_p9 = pnand %p80_p8, %p74_p5 }
  0x1b   :  { %v52_v1 = vpop.eup %51 }
  0x1c   :  { %v23_v2 = vmul.f32 2.0, %v52_v1 }
  0x1e   :  { %v24_v3 = vadd.f32 %v23_v2, %v21_v0 }
  0x20   :  { %26 = vrot.lane.b32.xlu0 %v24_v3, %s98_s11 }
  0x92   :  { %v27_v4 = vpop.permute.xlu0 %26 }
  0x93   :  { %v30_v5 = vsel %vm29_vm0, %v24_v3, %v27_v4 }
  0x94   :  { %32 = vst.msk [vmem:[#allocation5] sm:$0x3] %vm31_vm1, %v30_v5 }
  0x95   :  { %84 = shalt.err (!%p81_p9)
}
  0x96   :  { %42 = dma.vmem_to_hbm [thread:$0]  %s40_s13, 32, %s117_s1, [#allocation4]  }
  0x97   :  { %95 = dma.done.wait [#allocation4], 32  }
  0x98   :  { %96 = vsyncadd [#allocation4], 4294967264 }
  0x99   :  { %46 = vsyncpa [#allocation3], 1 }
  0x9a   :  { %47 = vsyncpa [#allocation4], 1 }

</bundles_post_ra>
